<compile_context>
chip_gen: v5e
topology: v5e:2x2
jax: 0.10.0
libtpu: 0.0.40
codegen_flags: <defaults>
</compile_context>

<pallas_src>
import math

import jax
import jax.numpy as jnp
from jax.experimental import pallas as pl
from jax.experimental.pallas import tpu as pltpu


# ---------------------------------------------------------------------------
# Kernels: one (batch, M-tile, N-tile) output block, reduced over the K grid
# axis.  Batch dim of every block is Squeezed, so refs are 2-D tiles.
# ---------------------------------------------------------------------------
def _mm_kernel_direct(a_ref, b_ref, o_ref):
    """out dtype == accumulation dtype: accumulate straight into o_ref
    (its block index ignores k, so it stays VMEM-resident across K)."""
    k = pl.program_id(3)

    @pl.when(k == 0)
    def _():
        o_ref[...] = jnp.zeros_like(o_ref)

    o_ref[...] += jnp.dot(a_ref[...], b_ref[...],
                          preferred_element_type=o_ref.dtype)


def _mm_kernel_acc(a_ref, b_ref, o_ref, acc_ref):
    """Generic path: accumulate in scratch, cast once on the last K step."""
    k = pl.program_id(3)

    @pl.when(k == 0)
    def _():
        acc_ref[...] = jnp.zeros_like(acc_ref)

    acc_ref[...] += jnp.dot(a_ref[...], b_ref[...],
                            preferred_element_type=acc_ref.dtype)

    @pl.when(k == pl.num_programs(3) - 1)
    def _():
        o_ref[...] = acc_ref[...].astype(o_ref.dtype)


# ---------------------------------------------------------------------------
# Tiling helpers
# ---------------------------------------------------------------------------
_TILE_CAP = 512   # per-dim cap: 512^2 f32 tile = 1 MiB; double-buffered
_LANE = 128       # A+B+O + acc fits comfortably in 16 MiB scoped VMEM (v5e)


def _round_up(x: int, m: int) -> int:
    return ((x + m - 1) // m) * m


def _choose_tile(dim: int, cap: int = _TILE_CAP, step: int = _LANE):
    """Return (tile, padded_dim).

    dim <= cap  -> full-extent tile, zero padding (always legal for BlockSpec).
    dim  > cap  -> 128-multiple tile <= cap minimising zero padding
                   (ties broken toward the largest tile to cut re-streaming
                   and per-grid-step overhead)."""
    if dim <= cap:
        return dim, dim
    best_t, best_pad = step, _round_up(dim, step)
    t = 2 * step
    while t <= cap:
        padded = _round_up(dim, t)
        if padded <= best_pad:
            best_t, best_pad = t, padded
        t += step
    return best_t, best_pad


# ---------------------------------------------------------------------------
# Core batched matmul: a3 (Ba, M, K) @ b3 (Bb, K, N) -> (B, M, N),
# with Ba, Bb in {1, B} (batch-1 operands are NOT broadcast-materialised).
# ---------------------------------------------------------------------------
def _batched_matmul(a3: jax.Array, b3: jax.Array, out_batch: int,
                    out_dtype) -> jax.Array:
    Ba, M, K = a3.shape
    Bb, _, N = b3.shape
    B = out_batch

    tm, Mp = _choose_tile(M)
    tk, Kp = _choose_tile(K)
    tn, Np = _choose_tile(N)

    # Zero padding is exact for matmul; it is only applied when a dim exceeds
    # the tile cap and is not already a multiple of the chosen tile (K must be
    # zero-padded for correctness of the K-axis reduction).
    if (Mp, Kp) != (M, K):
        a3 = jnp.pad(a3, ((0, 0), (0, Mp - M), (0, Kp - K)))
    if (Kp, Np) != (K, N):
        b3 = jnp.pad(b3, ((0, 0), (0, Kp - K), (0, Np - N)))

    gm, gn, gk = Mp // tm, Np // tn, Kp // tk
    grid = (B, gm, gn, gk)

    a_map = ((lambda bb, i, j, k: (bb, i, k)) if Ba > 1 else
             (lambda bb, i, j, k: (0, i, k)))
    b_map = ((lambda bb, i, j, k: (bb, k, j)) if Bb > 1 else
             (lambda bb, i, j, k: (0, k, j)))
    o_map = lambda bb, i, j, k: (bb, i, j)

    integer = jnp.issubdtype(jnp.dtype(out_dtype), jnp.integer)
    # TODO(synk): v7x's MXU has no integer path; integer matmuls will lower
    # differently there (kept for torch.matmul integer-exactness elsewhere).
    acc_dtype = jnp.int32 if integer else jnp.float32
    direct = jnp.dtype(out_dtype) == jnp.dtype(acc_dtype)

    if direct:
        kernel = _mm_kernel_direct
        scratch = []
    else:
        kernel = _mm_kernel_acc
        scratch = [pltpu.VMEM((tm, tn), acc_dtype)]

    a_item = a3.dtype.itemsize
    b_item = b3.dtype.itemsize
    o_item = jnp.dtype(out_dtype).itemsize
    flops = 2 * B * Mp * Np * Kp
    bytes_accessed = (B * gn * Mp * Kp * a_item     # A re-streamed per N tile
                      + B * gm * Kp * Np * b_item   # B re-streamed per M tile
                      + B * Mp * Np * o_item)

    out = pl.pallas_call(
        kernel,
        out_shape=jax.ShapeDtypeStruct((B, Mp, Np), out_dtype),
        grid_spec=pltpu.PrefetchScalarGridSpec(
            num_scalar_prefetch=0,
            grid=grid,
            in_specs=[
                pl.BlockSpec((None, tm, tk), a_map),
                pl.BlockSpec((None, tk, tn), b_map),
            ],
            out_specs=pl.BlockSpec((None, tm, tn), o_map),
            scratch_shapes=scratch,
        ),
        compiler_params=pltpu.CompilerParams(
            dimension_semantics=("parallel", "parallel", "parallel",
                                 "arbitrary"),
        ),
        cost_estimate=pl.CostEstimate(
            flops=flops, transcendentals=0, bytes_accessed=bytes_accessed),
    )(a3, b3)

    if (Mp, Np) != (M, N):
        out = out[:, :M, :N]
    return out


def _flatten_batch(x: jax.Array, batch, m: int, n: int) -> jax.Array:
    """Reshape x (batch dims + (m, n)) to (B or 1, m, n) without materialising
    a broadcast copy when its batch dims are all 1."""
    bshape = x.shape[:-2]
    if bshape == batch:
        return x.reshape((-1, m, n)) if batch else x.reshape((1, m, n))
    if math.prod(bshape) == 1:       # includes bshape == ()
        return x.reshape((1, m, n))
    # Genuine partial broadcast (rare): materialise the broadcast copy.
    return jnp.broadcast_to(x, batch + (m, n)).reshape((-1, m, n))


# ---------------------------------------------------------------------------
# torch.matmul-semantics wrapper
# ---------------------------------------------------------------------------
def matmul(a: jax.Array, b: jax.Array) -> jax.Array:
    """Pallas implementation of torch.matmul(a, b) semantics."""
    a = jnp.asarray(a)
    b = jnp.asarray(b)
    if a.ndim == 0 or b.ndim == 0:
        raise ValueError("matmul does not support 0-d inputs")

    out_dtype = jnp.result_type(a.dtype, b.dtype)

    a_1d = a.ndim == 1
    b_1d = b.ndim == 1
    if a_1d:
        a = a[None, :]
    if b_1d:
        b = b[:, None]

    M, K = a.shape[-2:]
    K2, N = b.shape[-2:]
    if K != K2:
        raise ValueError(f"Incompatible matmul shapes: {a.shape} @ {b.shape}")

    batch = jnp.broadcast_shapes(a.shape[:-2], b.shape[:-2])
    nbatch = math.prod(batch) if batch else 1

    if M == 0 or N == 0 or K == 0 or nbatch == 0:
        # Degenerate shapes: no MXU work (K == 0 -> zeros, matching torch).
        out = jnp.zeros(batch + (M, N), dtype=out_dtype)
    elif b.ndim == 2:
        # Shared (un-batched) RHS — the classic activations @ weight case:
        # fold every batch dim of A into M so the MXU gets full-height tiles
        # and the weight is streamed from HBM only once.
        a2 = a.reshape((-1, K))
        out2 = _batched_matmul(a2[None], b[None], 1, out_dtype)[0]
        out = out2.reshape(batch + (M, N))
    else:
        # TODO(synk): for genuinely batched tiny matmuls (M, N <= 128) a
        # batch-block > 1 would amortise per-grid-step overhead further.
        a3 = _flatten_batch(a, batch, M, K)
        b3 = _flatten_batch(b, batch, K, N)
        out3 = _batched_matmul(a3, b3, nbatch, out_dtype)
        out = out3.reshape(batch + (M, N))

    if a_1d and b_1d:
        out = out[..., 0, 0]
    elif a_1d:
        out = out[..., 0, :]
    elif b_1d:
        out = out[..., :, 0]
    return out


class Matmul:
    """Pallas analogue of the PyTorch helper module."""

    def __call__(self, *args, **kwargs):
        if kwargs:
            raise NotImplementedError("torch.matmul kwargs are not supported")
        return matmul(*args)


if __name__ == "__main__":
    key = jax.random.PRNGKey(0)
    k1, k2, k3, k4, k5 = jax.random.split(key, 5)
    mod = Matmul()

    # 1) Batched attention-style matmul: (B, H, S, D) @ (B, H, D, S).
    a = jax.random.normal(k1, (2, 4, 16, 32), dtype=jnp.float32)
    b = jax.random.normal(k2, (2, 4, 32, 16), dtype=jnp.float32)
    y = mod(a, b)
    jax.block_until_ready(y)
    ref = jnp.matmul(a, b)
    assert y.shape == ref.shape and y.dtype == ref.dtype
    assert bool(jnp.allclose(y, ref, rtol=2e-2, atol=2e-2))

    # 2) Batched activations @ shared 2-D weight (fold-into-M fast path).
    x = jax.random.normal(k3, (2, 8, 32), dtype=jnp.float32)
    w = jax.random.normal(k4, (32, 16), dtype=jnp.float32)
    y2 = mod(x, w)
    jax.block_until_ready(y2)
    ref2 = jnp.matmul(x, w)
    assert y2.shape == ref2.shape
    assert bool(jnp.allclose(y2, ref2, rtol=2e-2, atol=2e-2))

    # 3) Plain 2-D matmul.
    a2 = jax.random.normal(k5, (8, 32), dtype=jnp.float32)
    b2 = jax.random.normal(k1, (32, 16), dtype=jnp.float32)
    y3 = mod(a2, b2)
    jax.block_until_ready(y3)
    ref3 = jnp.matmul(a2, b2)
    assert y3.shape == ref3.shape
    assert bool(jnp.allclose(y3, ref3, rtol=2e-2, atol=2e-2))

    # 4) bf16 inputs (exercises the scratch-accumulator kernel path).
    ab16 = a.astype(jnp.bfloat16)
    bb16 = b.astype(jnp.bfloat16)
    y4 = mod(ab16, bb16)
    jax.block_until_ready(y4)
    ref4 = jnp.matmul(ab16.astype(jnp.float32), bb16.astype(jnp.float32))
    assert y4.shape == ref4.shape and y4.dtype == jnp.bfloat16
    assert bool(jnp.allclose(y4.astype(jnp.float32), ref4,
                             rtol=5e-2, atol=5e-2))

    print("KERNEL_OK")
</pallas_src>

<mosaic_0001>
module attributes {stable_mosaic.version = 11 : i64} {
  func.func @_mm_kernel_direct(%arg0: i32, %arg1: i32, %arg2: i32, %arg3: i32, %arg4: memref<1x16x32xf32, #tpu.memory_space<vmem>>, %arg5: memref<1x32x16xf32, #tpu.memory_space<vmem>>, %arg6: memref<1x16x16xf32, #tpu.memory_space<vmem>>) attributes {dimension_semantics = [#tpu.dimension_semantics<parallel>, #tpu.dimension_semantics<parallel>, #tpu.dimension_semantics<parallel>, #tpu.dimension_semantics<arbitrary>], iteration_bounds = array<i64: 8, 1, 1, 1>, scalar_prefetch = 0 : i64, scratch_operands = 0 : i64, tpu.core_type = #tpu.core_type<tc>, window_params = [{transform_indices = @transform_0, window_bounds = array<i64: 1, 16, 32>}, {transform_indices = @transform_1, window_bounds = array<i64: 1, 32, 16>}, {transform_indices = @transform_2, window_bounds = array<i64: 1, 16, 16>}]} {
    %c0_i32 = arith.constant 0 : i32
    %0 = arith.cmpi eq, %arg3, %c0_i32 : i32
    %1 = arith.extui %0 : i1 to i32
    %c0_i32_0 = arith.constant 0 : i32
    %2 = arith.cmpi ne, %1, %c0_i32_0 : i32
    scf.if %2 {
      %cst_12 = arith.constant 0.000000e+00 : f32
      %14 = vector.broadcast %cst_12 : f32 to vector<16x16xf32>
      %c0_13 = arith.constant 0 : index
      %c0_14 = arith.constant 0 : index
      %c0_15 = arith.constant 0 : index
      %15 = vector.load %arg6[%c0_13, %c0_14, %c0_15] : memref<1x16x16xf32, #tpu.memory_space<vmem>>, vector<1x16x16xf32>
      %16 = vector.shape_cast %15 : vector<1x16x16xf32> to vector<16x16xf32>
      %17 = vector.shape_cast %14 : vector<16x16xf32> to vector<1x16x16xf32>
      tpu.vector_store %arg6[%c0_13, %c0_14, %c0_15], %17 {strides = array<i32>} : memref<1x16x16xf32, #tpu.memory_space<vmem>>, vector<1x16x16xf32>,
    } else {
    }
    %c0 = arith.constant 0 : index
    %c0_1 = arith.constant 0 : index
    %c0_2 = arith.constant 0 : index
    %3 = vector.load %arg6[%c0, %c0_1, %c0_2] : memref<1x16x16xf32, #tpu.memory_space<vmem>>, vector<1x16x16xf32>
    %4 = vector.shape_cast %3 : vector<1x16x16xf32> to vector<16x16xf32>
    %c0_3 = arith.constant 0 : index
    %c0_4 = arith.constant 0 : index
    %c0_5 = arith.constant 0 : index
    %5 = vector.load %arg4[%c0_3, %c0_4, %c0_5] : memref<1x16x32xf32, #tpu.memory_space<vmem>>, vector<1x16x32xf32>
    %6 = vector.shape_cast %5 : vector<1x16x32xf32> to vector<16x32xf32>
    %c0_6 = arith.constant 0 : index
    %c0_7 = arith.constant 0 : index
    %c0_8 = arith.constant 0 : index
    %7 = vector.load %arg5[%c0_6, %c0_7, %c0_8] : memref<1x32x16xf32, #tpu.memory_space<vmem>>, vector<1x32x16xf32>
    %8 = vector.shape_cast %7 : vector<1x32x16xf32> to vector<32x16xf32>
    %cst = arith.constant dense<0.000000e+00> : vector<16x16xf32>
    %9 = tpu.matmul %6, %8, %cst {dimension_numbers = #tpu.dot_dimension_numbers<[1], [0], [0], [1], [0, 0, 1, 1], [], []>} : vector<16x32xf32>, vector<32x16xf32>, vector<16x16xf32> -> vector<16x16xf32>
    %10 = arith.addf %4, %9 : vector<16x16xf32>
    %c0_9 = arith.constant 0 : index
    %c0_10 = arith.constant 0 : index
    %c0_11 = arith.constant 0 : index
    %11 = vector.load %arg6[%c0_9, %c0_10, %c0_11] : memref<1x16x16xf32, #tpu.memory_space<vmem>>, vector<1x16x16xf32>
    %12 = vector.shape_cast %11 : vector<1x16x16xf32> to vector<16x16xf32>
    %13 = vector.shape_cast %10 : vector<16x16xf32> to vector<1x16x16xf32>
    tpu.vector_store %arg6[%c0_9, %c0_10, %c0_11], %13 {strides = array<i32>} : memref<1x16x16xf32, #tpu.memory_space<vmem>>, vector<1x16x16xf32>,
    return
  }
  func.func @transform_0(%arg0: i32, %arg1: i32, %arg2: i32, %arg3: i32) -> (i32, i32, i32) {
    %c0_i32 = arith.constant 0 : i32
    return %arg0, %arg1, %arg3 : i32, i32, i32
  }
  func.func @transform_1(%arg0: i32, %arg1: i32, %arg2: i32, %arg3: i32) -> (i32, i32, i32) {
    %c0_i32 = arith.constant 0 : i32
    return %arg0, %arg3, %arg2 : i32, i32, i32
  }
  func.func @transform_2(%arg0: i32, %arg1: i32, %arg2: i32, %arg3: i32) -> (i32, i32, i32) {
    %c0_i32 = arith.constant 0 : i32
    return %arg0, %arg1, %arg2 : i32, i32, i32
  }
}

</mosaic_0001>

<bundles_post_ra>
// kernel: tpu_custom_call.1
= control target key start
LH: loop header
LB: loop body
LE: loop exit
PB: predicated region body
PF: predicated region fallthrough
CT: control target
= control target key end

     0   :  { %7 = vsyncpa [#allocation3], 0  ;;  %s723_s0 = inlined_call_operand.vmem [shape: f32[8,16,32], index: 0, kind: input, shape index: {}]   ;;  %s724_s1 = inlined_call_operand.vmem [shape: f32[8,32,16], index: 1, kind: input, shape index: {}]   ;;  %s725_s2 = inlined_call_operand.hbm [shape: f32[8,16,16], index: 2, kind: output, shape index: {}]  }
   0x1   :  { %9 = vsyncpa [#allocation3 + $0x1], 0  ;;  %s606_s9 = smov 0   ;;  %s608_s10 = smov 0  }
   0x2   :  { %s610_s11 = smov 0   ;;  %s612_s12 = smov 0  }
   0x3   :  { %s614_s13 = smov 0   ;;  %s616_s14 = smov 0  }
   0x4 LB: > { %s426_s15 = sadd.s32 4294967295, %s586_s14   ;;  %s427_s16 = sadd.s32 4294967294, %s586_s14   ;;  %s586_s14 = sphi %s616_s14, %s15_s14   ;;  %s582_s13 = sphi %s614_s13, %s732_s13   ;;  %s578_s12 = sphi %s612_s12, %s731_s12   ;;  %s574_s11 = sphi %s610_s11, %s730_s11   ;;  %s570_s10 = sphi %s608_s10, %s729_s10   ;;  %s566_s9 = sphi %s606_s9, %s728_s9  }
   0x5   : > { %s41_s17 = sadd.s32 1, %s582_s13  ;;  %s112_s18 = sadd.s32 1, %s574_s11 }
   0x6   : > { %p43_p0 = scmp.ge.s32.totalorder %s41_s17, 8  ;;  %p122_p1 = scmp.ne.s32.totalorder %s574_s11, %s570_s10 }
   0x7   : > { %p123_p2 = scmp.eq.s32.totalorder %s426_s15, 7  ;;  %p128_p3 = scmp.ne.s32.totalorder %s570_s10, %s566_s9 }
   0x8   : > { %s734_s17 = smov (%p43_p0, %s41_s17), 0  ;;  %p129_p5 = scmp.eq.s32.totalorder %s427_s16, 7 }
   0x9   : > { %p646_p4 = por %p123_p2, %p122_p1  ;;  %s105_s20 = ssub.s32 %s582_s13, %s734_s17 }
   0xa   : > { %p430_p6 = scmp.ge.s32.totalorder %s586_s14, 1  ;;  %p110_p7 = scmp.eq.s32.totalorder %s105_s20, 0 }
   0xb   : > { %p653_p8 = por %p129_p5, %p128_p3  ;;  %p179_p9 = scmp.lt.s32.totalorder %s586_s14, 9 }
   0xc   : > { %s659_s22 = scalar_select %p110_p7, %s574_s11, %s112_s18  }
   0xd   : > { %p180_p10 = pnand %p430_p6, %p179_p9 }
   0xe   : > { %p221_p11 = scmp.lt.s32.totalorder (!%p180_p10), %s578_s12, 7  ;;  %s217_s23 = sand.u32 (!%p180_p10), 1, %s570_s10  }
   0xf   : > { %183 = sbr.rel (%p180_p10) target bundleno = 165 (0xa5), region = 28  ;;  %s431_s24 = sshll.u32 (!%p180_p10), %s217_s23, 4 }
  0x10   : > { %s666_s27 = scalar_lea.vmem (!%p180_p10), [#allocation2], %s431_s24  ;;  %s445_s7 = sshll.u32 (!%p180_p10), %s578_s12, 4 }
  0x11   : > { %s312_s16 = scalar_lea.hbm (!%p180_p10), %s725_s2, %s445_s7  ;;  %s313_s18 = sshll.u32 (!%p180_p10), %s666_s27, 4  ;;  %s314_s18 = int_to_ptr.vmem [resolvable:$true] %s313_s18 }
  0x12   : > { %s315_s20 = sshll.u32 (!%p180_p10), %s312_s16, 4  ;;  %s528_s29 = scalar_lea.hbm (!%p180_p10), %s725_s2, 128  ;;  %s316_s20 = int_to_ptr.hbm [resolvable:$true] %s315_s20 }
  0x13   : > { %s522_s24 = sshra.s32 (!%p180_p10), %s316_s20, 4  ;;  %s523_s24 = int_to_ptr.hbm [resolvable:$true] %s522_s24 }
  0x14   : > { %vm251_vm0 = vcmask 130048   ;;  %s222_s25 = scalar_select %p221_p11, %s578_s12, 7  ;;  %v588_v0 = vmov 0.0   ;;  %vm262_vm1 = vcmask 261120  }
  0x15   : > { %252 = vst.msk [vmem:[%s666_s27] sm:$0xff] %vm251_vm0, %v588_v0  ;;  %s298_s12 = scalar_lea.sflag [#allocation3], %s217_s23  ;;  %p529_p1 = scmp.lt.s32.totalorder %s523_s24, %s725_s2 }
  0x16   : > { %s444_s26 = sshll.u32 %s222_s25, 5  ;;  %s443_s3 = sshll.u32 %s222_s25, 4  ;;  %253 = vst.msk [vmem:[%s666_s27 + $0x8] sm:$0xff] %vm251_vm0, %v588_v0 }
  0x17   : > { %s244_s30 = scalar_lea.vmem %s724_s1, %s444_s26  ;;  %s231_s6 = scalar_lea.vmem %s723_s0, %s443_s3 }
  0x18   : > { %v261_v1 = vld [vmem:[%s244_s30 + $0x18] sm:$0xff]  ;;  %v260_v2 = vld [vmem:[%s244_s30 + $0x10] sm:$0xff]  ;;  %v259_v3 = vld [vmem:[%s244_s30 + $0x8] sm:$0xff]  ;;  %s524_s25 = scalar_lea.hbm %s523_s24, 16 }
  0x19   : > { %281 = vmatpush.msra.mxu0 %v261_v1  ;;  %446 = vmatpush.msra.mxu1 %v261_v1  ;;  %v258_v4 = vld [vmem:[%s244_s30] sm:$0xff]  ;;  %v257_v6 = vld [vmem:[%s231_s6 + $0x8] sm:$0xff]  ;;  %p525_p12 = scmp.ne.s32.totalorder %s523_s24, %s524_s25  ;;  %p530_p2 = scmp.lt.s32.totalorder %s528_s29, %s524_s25 }
  0x1a   : > { %v256_v5 = vld [vmem:[%s231_s6] sm:$0xff] }
  0x1b   : > { %282 = vmatpush.msra.mxu0 %v260_v2  ;;  %447 = vmatpush.msra.mxu1 %v260_v2  ;;  %p526_p13 = pnand %p525_p12, %p646_p4  ;;  %p531_p3 = por %p530_p2, %p529_p1 }
  0x1c   : > { %v254_v7 = vld [vmem:[%s666_s27] sm:$0xff] }
  0x1d   : > { %283 = vmatpush.msra.mxu0 %v259_v3  ;;  %448 = vmatpush.msra.mxu1 %v259_v3  ;;  %v255_v8 = vld [vmem:[%s666_s27 + $0x8] sm:$0xff]  ;;  %p527_p0 = pneg %p526_p13 }
  0x1f   : > { %284 = vmatpush.msra.mxu0 %v258_v4  ;;  %449 = vmatpush.msra.mxu1 %v258_v4  ;;  %p532_p5 = pnand %p531_p3, %p527_p0 }
  0x20   : > { %436 = vmatmul.msk.f32.vlgmr.msra.gmra.mxu0 %vm262_vm1, %v256_v5  ;;  %437 = vmatmul.msk.f32.vlgmr.msra.gmra.mxu1 %vm262_vm1, %v257_v6 }
  0x9d   : > { %v286_v9 = vpop.f32.mrf.mxu0  ;;  %v289_v10 = vpop.f32.mrf.mxu1 }
  0x9e   : > { %v292_v11 = vadd.f32 %v286_v9, %v254_v7  ;;  %v293_v12 = vadd.f32 %v289_v10, %v255_v8 }
  0xa0   : > { %295 = vst.msk [vmem:[%s666_s27] sm:$0xff] %vm251_vm0, %v292_v11 }
  0xa1   : > { %296 = vst.msk [vmem:[%s666_s27 + $0x8] sm:$0xff] %vm251_vm0, %v293_v12 }
  0xa2   : > { %535 = shalt.err (!%p532_p5)
}
  0xa3   : > { %s589_s23 = smov 128   ;;  %s590_s27 = smov 8  }
  0xa4   : > { %450 = dma.vmem_to_hbm [thread:$0]  (%p646_p4), %s314_s18, 256, %s316_s20, %s298_s12, %s589_s23, %s589_s23, %s590_s27  }
  0xa5 PF: > { %p456_p6 = scmp.ge.s32.totalorder %s586_s14, 2  ;;  %s330_s4 = sand.u32 1, %s566_s9  }
  0xa6   : > { %s331_s5 = scalar_lea.sflag [#allocation3], %s330_s4 }
  0xa7   : > { %p453_p7 = pnand %p456_p6, %p653_p8 }
  0xa9   : > { %p454_p9 = pneg %p453_p7 }
  0xab   : > { %561 = dma.done.wait (%p454_p9), %s331_s5, 256  }
  0xac   : > { %563 = vsyncadd (%p454_p9), %s331_s5, 4294967040  ;;  %s15_s14 = sadd.s32 1, %s586_s14   ;;  %s728_s9 = smov %s570_s10 }
  0xad   : > { %p12_p10 = scmp.ge.s32.totalorder %s15_s14, 10   ;;  %s729_s10 = smov %s574_s11 }
  0xae   : > { %s730_s11 = smov %s659_s22  ;;  %s731_s12 = smov %s582_s13 }
  0xaf   : > { %s732_s13 = smov %s734_s17  ;;  %14 = sbr.rel (!%p12_p10) target bundleno = 4 (0x4), region = 70 }
  0xb4   :  { %337 = vsyncpa [#allocation3], 1 }
  0xb5   :  { %339 = vsyncpa [#allocation3 + $0x1], 1 }

</bundles_post_ra>
